<compile_context>
chip_gen: v7x
topology: tpu7x:2x2x1
jax: 0.10.0
libtpu: 0.0.40
codegen_flags: <defaults>
</compile_context>

<pallas_src>
import functools

import jax
import jax.numpy as jnp
from jax.experimental import pallas as pl
from jax.experimental.pallas import tpu as pltpu


def _round_up(x, m):
    return (x + m - 1) // m * m


# --------------------------------------------------------------------------
# Kernel
# --------------------------------------------------------------------------
def _double_q_kernel(n_layers, use_tanh, gamma, compute_max,
                     obs_ref, act_ref, *refs):
    """Runs both Q-MLPs on one batch tile.

    refs layout (per net, repeated for Q1 then Q2):
        [w0_obs, w0_act, b0, w1, b1, ..., w_{L-1}, b_{L-1}]
    followed by the output ref. Biases are (1, width) float32.
    """
    out_ref = refs[-1]
    per_net = 2 * n_layers + 1
    wb1 = refs[0:per_net]
    wb2 = refs[per_net:2 * per_net]

    obs = obs_ref[...]
    act = act_ref[...]

    def run_net(wb):
        w0o = wb[0][...]
        w0a = wb[1][...]
        b0 = wb[2][...]
        # Layer 0: split matmul replaces the obs/action concat.
        h = (jnp.dot(obs.astype(w0o.dtype), w0o,
                     preferred_element_type=jnp.float32)
             + jnp.dot(act.astype(w0a.dtype), w0a,
                       preferred_element_type=jnp.float32)
             + b0)
        if n_layers > 1:
            h = jnp.maximum(h, 0.0)
        for li in range(1, n_layers):
            w = wb[2 * li + 1][...]
            b = wb[2 * li + 2][...]
            h = jnp.dot(h.astype(w.dtype), w,
                        preferred_element_type=jnp.float32) + b
            if li < n_layers - 1:
                h = jnp.maximum(h, 0.0)
        return h  # (tile_b, 1) float32

    q1 = run_net(wb1)
    q2 = run_net(wb2)

    if use_tanh:
        scale = 1.0 / (1.0 - gamma)
        q1 = jnp.tanh(q1) * scale
        q2 = jnp.tanh(q2) * scale

    if compute_max:
        out_ref[...] = jnp.maximum(q1, q2).astype(out_ref.dtype)
    else:
        out_ref[...] = jnp.concatenate([q1, q2], axis=-1).astype(out_ref.dtype)


# --------------------------------------------------------------------------
# Wrapper-side helpers
# --------------------------------------------------------------------------
def pack_double_q_params(params_q1, params_q2, obs_dim,
                         param_dtype=jnp.float32):
    """Pre-split/cast both Q-nets' parameters into the kernel's flat layout.

    Call this once per parameter update (outside the per-step hot path).
    params_q*: list of (W, b) with W of shape (in_features, out_features).
    """
    assert len(params_q1) == len(params_q2)
    flat = []
    for params in (params_q1, params_q2):
        for li, (w, b) in enumerate(params):
            if li == 0:
                flat.append(jnp.asarray(w[:obs_dim], param_dtype))   # obs part
                flat.append(jnp.asarray(w[obs_dim:], param_dtype))   # act part
            else:
                flat.append(jnp.asarray(w, param_dtype))
            flat.append(jnp.asarray(b, jnp.float32).reshape(1, -1))
    return tuple(flat)


def _const_spec(shape):
    """Grid-invariant BlockSpec, single-buffered when supported."""
    idx = lambda i: (0,) * len(shape)
    if hasattr(pl, "Buffered"):
        try:
            return pl.BlockSpec(shape, idx, pipeline_mode=pl.Buffered(1))
        except TypeError:
            pass
    return pl.BlockSpec(shape, idx)


def _pick_tile_b(batch, tile_b):
    if batch >= 256:
        # >= 2 grid steps so both v7x TensorCores get work; lane/sublane dense.
        tb = min(int(tile_b), batch // 2)
        tb = max(128, (tb // 128) * 128)
    else:
        tb = _round_up(batch, 8)
    return tb


def _forward_xla(obs, action, packed, n_layers, use_tanh, gamma, both):
    """Plain-XLA fallback (small batch / small width) using the same math."""
    per_net = 2 * n_layers + 1

    def run(wb):
        h = (obs.astype(jnp.float32) @ wb[0].astype(jnp.float32)
             + action.astype(jnp.float32) @ wb[1].astype(jnp.float32)
             + wb[2])
        if n_layers > 1:
            h = jnp.maximum(h, 0.0)
        for li in range(1, n_layers):
            h = h @ wb[2 * li + 1].astype(jnp.float32) + wb[2 * li + 2]
            if li < n_layers - 1:
                h = jnp.maximum(h, 0.0)
        if use_tanh:
            h = jnp.tanh(h) * (1.0 / (1.0 - gamma))
        return h

    q1 = run(packed[:per_net])
    q2 = run(packed[per_net:2 * per_net])
    if both:
        return q1, q2
    return jnp.maximum(q1, q2)


# --------------------------------------------------------------------------
# Public forward
# --------------------------------------------------------------------------
def double_q_critic_max(obs, action, params_q1=None, params_q2=None, *,
                        packed_params=None, use_tanh=False, gamma=0.99,
                        both=False, tile_b=1024, param_dtype=jnp.float32,
                        use_pallas=None):
    """Pallas-backed forward of DoubleQCriticMax.

    Either pass raw (params_q1, params_q2) or a pre-built `packed_params`
    from pack_double_q_params (preferred in a training loop).
    param_dtype: jnp.float32 (default) or jnp.bfloat16 (weight storage/MXU
    dtype on v6e/v7x; accumulation and elementwise math remain f32).
    """
    assert obs.ndim == 2 and action.ndim == 2
    assert obs.shape[0] == action.shape[0]
    batch = obs.shape[0]
    obs_dim = obs.shape[1]
    act_dim = action.shape[1]

    if packed_params is None:
        assert params_q1 is not None and params_q2 is not None
        packed = pack_double_q_params(params_q1, params_q2, obs_dim,
                                      param_dtype)
        n_layers = len(params_q1)
    else:
        packed = tuple(packed_params)
        per_net = len(packed) // 2
        n_layers = (per_net - 1) // 2

    per_net = 2 * n_layers + 1
    max_width = max(int(a.shape[-1]) for a in packed)

    if use_pallas is None:
        # Tiny problems are dominated by fixed pallas_call/DMA setup cost.
        use_pallas = not (batch <= 1024 and max_width <= 256)
    if not use_pallas:
        return _forward_xla(obs, action, packed, n_layers, use_tanh, gamma,
                            both)

    out_w = 2 if both else 1
    tb = _pick_tile_b(batch, tile_b)
    grid = (pl.cdiv(batch, tb),)   # partial last block; no jnp.pad copy

    # --- BlockSpecs ---
    in_specs = [pl.BlockSpec((tb, obs_dim), lambda i: (i, 0)),
                pl.BlockSpec((tb, act_dim), lambda i: (i, 0))]
    for a in packed:
        in_specs.append(_const_spec(a.shape))
    out_spec = pl.BlockSpec((tb, out_w), lambda i: (i, 0))
    out_shape = jax.ShapeDtypeStruct((batch, out_w), jnp.float32)

    # --- VMEM sizing (v5e scoped default 16 MiB, v7x 32 MiB are too small) ---
    param_bytes = sum(a.size * a.dtype.itemsize for a in packed)
    io_bytes = (2 * 2 * tb * (obs_dim * obs.dtype.itemsize
                              + act_dim * action.dtype.itemsize)
                + 2 * tb * out_w * 4)
    act_bytes = 4 * tb * max_width * 4
    vmem_needed = param_bytes + io_bytes + act_bytes + (2 << 20)
    vmem_limit = int(min(max(vmem_needed, 16 << 20), 64 << 20))

    # --- advisory cost estimate ---
    weight_arrays = []
    for net in range(2):
        base = net * per_net
        weight_arrays += [packed[base + 0], packed[base + 1]]
        for li in range(1, n_layers):
            weight_arrays.append(packed[base + 2 * li + 1])
    flops = sum(2 * batch * int(w.shape[0]) * int(w.shape[1])
                for w in weight_arrays)
    transcendentals = 2 * batch if use_tanh else 0
    bytes_accessed = (obs.size * obs.dtype.itemsize
                      + action.size * action.dtype.itemsize
                      + param_bytes + batch * out_w * 4)

    kernel = functools.partial(_double_q_kernel, n_layers, bool(use_tanh),
                               float(gamma), not both)

    out = pl.pallas_call(
        kernel,
        out_shape=out_shape,
        grid=grid,
        in_specs=in_specs,
        out_specs=out_spec,
        compiler_params=pltpu.CompilerParams(
            dimension_semantics=("parallel",),
            vmem_limit_bytes=vmem_limit),
        cost_estimate=pl.CostEstimate(
            flops=flops, transcendentals=transcendentals,
            bytes_accessed=bytes_accessed),
    )(obs, action, *packed)

    if both:
        return out[:, 0:1], out[:, 1:2]
    return out


# --------------------------------------------------------------------------
# Reference + self-test
# --------------------------------------------------------------------------
def init_mlp_params(key, in_dim, hidden_dims, out_dim):
    """Deterministic synthetic init: scaled-normal weights, zero bias.

    (The PyTorch module uses orthogonal init + zero bias; values are synthetic
    here, only shapes/semantics matter.)
    """
    dims = [in_dim] + list(hidden_dims) + [out_dim]
    params = []
    for i in range(len(dims) - 1):
        key, sub = jax.random.split(key)
        w = jax.random.normal(sub, (dims[i], dims[i + 1]), jnp.float32)
        w = w * (1.0 / jnp.sqrt(jnp.float32(dims[i])))
        b = jnp.zeros((dims[i + 1],), jnp.float32)
        params.append((w, b))
    return params, key


def _reference_forward(obs, action, params_q1, params_q2,
                       use_tanh=False, gamma=0.99, both=False):
    x = jnp.concatenate([obs, action], axis=-1)

    def run(params, x):
        h = x
        for i, (w, b) in enumerate(params):
            h = h @ w + b
            if i < len(params) - 1:
                h = jnp.maximum(h, 0.0)
        if use_tanh:
            h = jnp.tanh(h) * (1.0 / (1.0 - gamma))
        return h

    q1 = run(params_q1, x)
    q2 = run(params_q2, x)
    if both:
        return q1, q2
    return jnp.maximum(q1, q2)


if __name__ == "__main__":
    key = jax.random.PRNGKey(0)
    batch, obs_dim, action_dim = 8, 10, 6
    hidden_dims = (32, 32)

    key, k_obs, k_act = jax.random.split(key, 3)
    obs = jax.random.normal(k_obs, (batch, obs_dim), jnp.float32)
    action = jax.random.normal(k_act, (batch, action_dim), jnp.float32)

    params_q1, key = init_mlp_params(key, obs_dim + action_dim, hidden_dims, 1)
    params_q2, key = init_mlp_params(key, obs_dim + action_dim, hidden_dims, 1)

    # Pre-pack once (the recommended hot-loop usage).
    packed = pack_double_q_params(params_q1, params_q2, obs_dim)

    # both=False path (the common one): single (batch, 1) qmax output.
    qmax = double_q_critic_max(obs, action, packed_params=packed,
                               use_pallas=True)
    jax.block_until_ready(qmax)
    ref = _reference_forward(obs, action, params_q1, params_q2)
    assert qmax.shape == (batch, 1)
    assert jnp.allclose(qmax, ref, atol=1e-5, rtol=1e-5)

    # both=True path: (q1, q2) from the packed (batch, 2) output.
    q1, q2 = double_q_critic_max(obs, action, packed_params=packed,
                                 both=True, use_pallas=True)
    jax.block_until_ready(q2)
    r1, r2 = _reference_forward(obs, action, params_q1, params_q2, both=True)
    assert jnp.allclose(q1, r1, atol=1e-5, rtol=1e-5)
    assert jnp.allclose(q2, r2, atol=1e-5, rtol=1e-5)

    # use_tanh path (exercises the EUP tanh + 1/(1-gamma) scale).
    qt = double_q_critic_max(obs, action, packed_params=packed,
                             use_tanh=True, gamma=0.99, use_pallas=True)
    jax.block_until_ready(qt)
    rt = _reference_forward(obs, action, params_q1, params_q2, use_tanh=True,
                            gamma=0.99)
    assert jnp.allclose(qt, rt, atol=1e-5, rtol=1e-5)

    print("KERNEL_OK")
</pallas_src>

<mosaic_0001>
module attributes {stable_mosaic.version = 11 : i64} {
  func.func @_double_q_kernel(%arg0: i32, %arg1: memref<8x10xf32, #tpu.memory_space<vmem>>, %arg2: memref<8x6xf32, #tpu.memory_space<vmem>>, %arg3: memref<10x32xf32, #tpu.memory_space<vmem>>, %arg4: memref<6x32xf32, #tpu.memory_space<vmem>>, %arg5: memref<1x32xf32, #tpu.memory_space<vmem>>, %arg6: memref<32x32xf32, #tpu.memory_space<vmem>>, %arg7: memref<1x32xf32, #tpu.memory_space<vmem>>, %arg8: memref<32x1xf32, #tpu.memory_space<vmem>>, %arg9: memref<1x1xf32, #tpu.memory_space<vmem>>, %arg10: memref<10x32xf32, #tpu.memory_space<vmem>>, %arg11: memref<6x32xf32, #tpu.memory_space<vmem>>, %arg12: memref<1x32xf32, #tpu.memory_space<vmem>>, %arg13: memref<32x32xf32, #tpu.memory_space<vmem>>, %arg14: memref<1x32xf32, #tpu.memory_space<vmem>>, %arg15: memref<32x1xf32, #tpu.memory_space<vmem>>, %arg16: memref<1x1xf32, #tpu.memory_space<vmem>>, %arg17: memref<8x1xf32, #tpu.memory_space<vmem>>) attributes {dimension_semantics = [#tpu.dimension_semantics<parallel>], iteration_bounds = array<i64: 1>, scalar_prefetch = 0 : i64, scratch_operands = 0 : i64, tpu.core_type = #tpu.core_type<tc>, window_params = [{transform_indices = @transform_0, window_bounds = array<i64: 8, 10>}, {transform_indices = @transform_1, window_bounds = array<i64: 8, 6>}, {pipeline_mode = #tpu.pipeline_mode<synchronous>, transform_indices = @transform_2, window_bounds = array<i64: 10, 32>}, {pipeline_mode = #tpu.pipeline_mode<synchronous>, transform_indices = @transform_3, window_bounds = array<i64: 6, 32>}, {pipeline_mode = #tpu.pipeline_mode<synchronous>, transform_indices = @transform_4, window_bounds = array<i64: 1, 32>}, {pipeline_mode = #tpu.pipeline_mode<synchronous>, transform_indices = @transform_5, window_bounds = array<i64: 32, 32>}, {pipeline_mode = #tpu.pipeline_mode<synchronous>, transform_indices = @transform_6, window_bounds = array<i64: 1, 32>}, {pipeline_mode = #tpu.pipeline_mode<synchronous>, transform_indices = @transform_7, window_bounds = array<i64: 32, 1>}, {pipeline_mode = #tpu.pipeline_mode<synchronous>, transform_indices = @transform_8, window_bounds = array<i64: 1, 1>}, {pipeline_mode = #tpu.pipeline_mode<synchronous>, transform_indices = @transform_9, window_bounds = array<i64: 10, 32>}, {pipeline_mode = #tpu.pipeline_mode<synchronous>, transform_indices = @transform_10, window_bounds = array<i64: 6, 32>}, {pipeline_mode = #tpu.pipeline_mode<synchronous>, transform_indices = @transform_11, window_bounds = array<i64: 1, 32>}, {pipeline_mode = #tpu.pipeline_mode<synchronous>, transform_indices = @transform_12, window_bounds = array<i64: 32, 32>}, {pipeline_mode = #tpu.pipeline_mode<synchronous>, transform_indices = @transform_13, window_bounds = array<i64: 1, 32>}, {pipeline_mode = #tpu.pipeline_mode<synchronous>, transform_indices = @transform_14, window_bounds = array<i64: 32, 1>}, {pipeline_mode = #tpu.pipeline_mode<synchronous>, transform_indices = @transform_15, window_bounds = array<i64: 1, 1>}, {transform_indices = @transform_16, window_bounds = array<i64: 8, 1>}]} {
    %c0 = arith.constant 0 : index
    %c0_0 = arith.constant 0 : index
    %0 = vector.load %arg1[%c0, %c0_0] : memref<8x10xf32, #tpu.memory_space<vmem>>, vector<8x10xf32>
    %c0_1 = arith.constant 0 : index
    %c0_2 = arith.constant 0 : index
    %1 = vector.load %arg2[%c0_1, %c0_2] : memref<8x6xf32, #tpu.memory_space<vmem>>, vector<8x6xf32>
    %c0_3 = arith.constant 0 : index
    %c0_4 = arith.constant 0 : index
    %2 = vector.load %arg3[%c0_3, %c0_4] : memref<10x32xf32, #tpu.memory_space<vmem>>, vector<10x32xf32>
    %c0_5 = arith.constant 0 : index
    %c0_6 = arith.constant 0 : index
    %3 = vector.load %arg4[%c0_5, %c0_6] : memref<6x32xf32, #tpu.memory_space<vmem>>, vector<6x32xf32>
    %c0_7 = arith.constant 0 : index
    %c0_8 = arith.constant 0 : index
    %4 = vector.load %arg5[%c0_7, %c0_8] : memref<1x32xf32, #tpu.memory_space<vmem>>, vector<1x32xf32>
    %cst = arith.constant dense<0.000000e+00> : vector<8x32xf32>
    %5 = tpu.matmul %0, %2, %cst {dimension_numbers = #tpu.dot_dimension_numbers<[1], [0], [0], [1], [0, 0, 1, 1], [], []>} : vector<8x10xf32>, vector<10x32xf32>, vector<8x32xf32> -> vector<8x32xf32>
    %cst_9 = arith.constant dense<0.000000e+00> : vector<8x32xf32>
    %6 = tpu.matmul %1, %3, %cst_9 {dimension_numbers = #tpu.dot_dimension_numbers<[1], [0], [0], [1], [0, 0, 1, 1], [], []>} : vector<8x6xf32>, vector<6x32xf32>, vector<8x32xf32> -> vector<8x32xf32>
    %7 = arith.addf %5, %6 : vector<8x32xf32>
    %8 = vector.broadcast %4 : vector<1x32xf32> to vector<8x32xf32>
    %9 = arith.addf %7, %8 : vector<8x32xf32>
    %cst_10 = arith.constant 0.000000e+00 : f32
    %10 = vector.broadcast %cst_10 : f32 to vector<8x32xf32>
    %11 = arith.maximumf %9, %10 : vector<8x32xf32>
    %c0_11 = arith.constant 0 : index
    %c0_12 = arith.constant 0 : index
    %12 = vector.load %arg6[%c0_11, %c0_12] : memref<32x32xf32, #tpu.memory_space<vmem>>, vector<32x32xf32>
    %c0_13 = arith.constant 0 : index
    %c0_14 = arith.constant 0 : index
    %13 = vector.load %arg7[%c0_13, %c0_14] : memref<1x32xf32, #tpu.memory_space<vmem>>, vector<1x32xf32>
    %cst_15 = arith.constant dense<0.000000e+00> : vector<8x32xf32>
    %14 = tpu.matmul %11, %12, %cst_15 {dimension_numbers = #tpu.dot_dimension_numbers<[1], [0], [0], [1], [0, 0, 1, 1], [], []>} : vector<8x32xf32>, vector<32x32xf32>, vector<8x32xf32> -> vector<8x32xf32>
    %15 = vector.broadcast %13 : vector<1x32xf32> to vector<8x32xf32>
    %16 = arith.addf %14, %15 : vector<8x32xf32>
    %cst_16 = arith.constant 0.000000e+00 : f32
    %17 = vector.broadcast %cst_16 : f32 to vector<8x32xf32>
    %18 = arith.maximumf %16, %17 : vector<8x32xf32>
    %c0_17 = arith.constant 0 : index
    %c0_18 = arith.constant 0 : index
    %19 = vector.load %arg8[%c0_17, %c0_18] : memref<32x1xf32, #tpu.memory_space<vmem>>, vector<32x1xf32>
    %c0_19 = arith.constant 0 : index
    %c0_20 = arith.constant 0 : index
    %20 = vector.load %arg9[%c0_19, %c0_20] : memref<1x1xf32, #tpu.memory_space<vmem>>, vector<1x1xf32>
    %cst_21 = arith.constant dense<0.000000e+00> : vector<8x1xf32>
    %21 = tpu.matmul %18, %19, %cst_21 {dimension_numbers = #tpu.dot_dimension_numbers<[1], [0], [0], [1], [0, 0, 1, 1], [], []>} : vector<8x32xf32>, vector<32x1xf32>, vector<8x1xf32> -> vector<8x1xf32>
    %22 = vector.broadcast %20 : vector<1x1xf32> to vector<8x1xf32>
    %23 = arith.addf %21, %22 : vector<8x1xf32>
    %c0_22 = arith.constant 0 : index
    %c0_23 = arith.constant 0 : index
    %24 = vector.load %arg10[%c0_22, %c0_23] : memref<10x32xf32, #tpu.memory_space<vmem>>, vector<10x32xf32>
    %c0_24 = arith.constant 0 : index
    %c0_25 = arith.constant 0 : index
    %25 = vector.load %arg11[%c0_24, %c0_25] : memref<6x32xf32, #tpu.memory_space<vmem>>, vector<6x32xf32>
    %c0_26 = arith.constant 0 : index
    %c0_27 = arith.constant 0 : index
    %26 = vector.load %arg12[%c0_26, %c0_27] : memref<1x32xf32, #tpu.memory_space<vmem>>, vector<1x32xf32>
    %cst_28 = arith.constant dense<0.000000e+00> : vector<8x32xf32>
    %27 = tpu.matmul %0, %24, %cst_28 {dimension_numbers = #tpu.dot_dimension_numbers<[1], [0], [0], [1], [0, 0, 1, 1], [], []>} : vector<8x10xf32>, vector<10x32xf32>, vector<8x32xf32> -> vector<8x32xf32>
    %cst_29 = arith.constant dense<0.000000e+00> : vector<8x32xf32>
    %28 = tpu.matmul %1, %25, %cst_29 {dimension_numbers = #tpu.dot_dimension_numbers<[1], [0], [0], [1], [0, 0, 1, 1], [], []>} : vector<8x6xf32>, vector<6x32xf32>, vector<8x32xf32> -> vector<8x32xf32>
    %29 = arith.addf %27, %28 : vector<8x32xf32>
    %30 = vector.broadcast %26 : vector<1x32xf32> to vector<8x32xf32>
    %31 = arith.addf %29, %30 : vector<8x32xf32>
    %cst_30 = arith.constant 0.000000e+00 : f32
    %32 = vector.broadcast %cst_30 : f32 to vector<8x32xf32>
    %33 = arith.maximumf %31, %32 : vector<8x32xf32>
    %c0_31 = arith.constant 0 : index
    %c0_32 = arith.constant 0 : index
    %34 = vector.load %arg13[%c0_31, %c0_32] : memref<32x32xf32, #tpu.memory_space<vmem>>, vector<32x32xf32>
    %c0_33 = arith.constant 0 : index
    %c0_34 = arith.constant 0 : index
    %35 = vector.load %arg14[%c0_33, %c0_34] : memref<1x32xf32, #tpu.memory_space<vmem>>, vector<1x32xf32>
    %cst_35 = arith.constant dense<0.000000e+00> : vector<8x32xf32>
    %36 = tpu.matmul %33, %34, %cst_35 {dimension_numbers = #tpu.dot_dimension_numbers<[1], [0], [0], [1], [0, 0, 1, 1], [], []>} : vector<8x32xf32>, vector<32x32xf32>, vector<8x32xf32> -> vector<8x32xf32>
    %37 = vector.broadcast %35 : vector<1x32xf32> to vector<8x32xf32>
    %38 = arith.addf %36, %37 : vector<8x32xf32>
    %cst_36 = arith.constant 0.000000e+00 : f32
    %39 = vector.broadcast %cst_36 : f32 to vector<8x32xf32>
    %40 = arith.maximumf %38, %39 : vector<8x32xf32>
    %c0_37 = arith.constant 0 : index
    %c0_38 = arith.constant 0 : index
    %41 = vector.load %arg15[%c0_37, %c0_38] : memref<32x1xf32, #tpu.memory_space<vmem>>, vector<32x1xf32>
    %c0_39 = arith.constant 0 : index
    %c0_40 = arith.constant 0 : index
    %42 = vector.load %arg16[%c0_39, %c0_40] : memref<1x1xf32, #tpu.memory_space<vmem>>, vector<1x1xf32>
    %cst_41 = arith.constant dense<0.000000e+00> : vector<8x1xf32>
    %43 = tpu.matmul %40, %41, %cst_41 {dimension_numbers = #tpu.dot_dimension_numbers<[1], [0], [0], [1], [0, 0, 1, 1], [], []>} : vector<8x32xf32>, vector<32x1xf32>, vector<8x1xf32> -> vector<8x1xf32>
    %44 = vector.broadcast %42 : vector<1x1xf32> to vector<8x1xf32>
    %45 = arith.addf %43, %44 : vector<8x1xf32>
    %46 = arith.maximumf %23, %45 : vector<8x1xf32>
    %c0_42 = arith.constant 0 : index
    %c0_43 = arith.constant 0 : index
    %47 = vector.load %arg17[%c0_42, %c0_43] : memref<8x1xf32, #tpu.memory_space<vmem>>, vector<8x1xf32>
    tpu.vector_store %arg17[%c0_42, %c0_43], %46 {strides = array<i32>} : memref<8x1xf32, #tpu.memory_space<vmem>>, vector<8x1xf32>,
    return
  }
  func.func @transform_0(%arg0: i32) -> (i32, i32) {
    %c0_i32 = arith.constant 0 : i32
    %c0_i32_0 = arith.constant 0 : i32
    return %arg0, %c0_i32 : i32, i32
  }
  func.func @transform_1(%arg0: i32) -> (i32, i32) {
    %c0_i32 = arith.constant 0 : i32
    %c0_i32_0 = arith.constant 0 : i32
    return %arg0, %c0_i32 : i32, i32
  }
  func.func @transform_2(%arg0: i32) -> (i32, i32) {
    %c0_i32 = arith.constant 0 : i32
    %c0_i32_0 = arith.constant 0 : i32
    %c0_i32_1 = arith.constant 0 : i32
    return %c0_i32, %c0_i32_0 : i32, i32
  }
  func.func @transform_3(%arg0: i32) -> (i32, i32) {
    %c0_i32 = arith.constant 0 : i32
    %c0_i32_0 = arith.constant 0 : i32
    %c0_i32_1 = arith.constant 0 : i32
    return %c0_i32, %c0_i32_0 : i32, i32
  }
  func.func @transform_4(%arg0: i32) -> (i32, i32) {
    %c0_i32 = arith.constant 0 : i32
    %c0_i32_0 = arith.constant 0 : i32
    %c0_i32_1 = arith.constant 0 : i32
    return %c0_i32, %c0_i32_0 : i32, i32
  }
  func.func @transform_5(%arg0: i32) -> (i32, i32) {
    %c0_i32 = arith.constant 0 : i32
    %c0_i32_0 = arith.constant 0 : i32
    %c0_i32_1 = arith.constant 0 : i32
    return %c0_i32, %c0_i32_0 : i32, i32
  }
  func.func @transform_6(%arg0: i32) -> (i32, i32) {
    %c0_i32 = arith.constant 0 : i32
    %c0_i32_0 = arith.constant 0 : i32
    %c0_i32_1 = arith.constant 0 : i32
    return %c0_i32, %c0_i32_0 : i32, i32
  }
  func.func @transform_7(%arg0: i32) -> (i32, i32) {
    %c0_i32 = arith.constant 0 : i32
    %c0_i32_0 = arith.constant 0 : i32
    %c0_i32_1 = arith.constant 0 : i32
    return %c0_i32, %c0_i32_0 : i32, i32
  }
  func.func @transform_8(%arg0: i32) -> (i32, i32) {
    %c0_i32 = arith.constant 0 : i32
    %c0_i32_0 = arith.constant 0 : i32
    %c0_i32_1 = arith.constant 0 : i32
    return %c0_i32, %c0_i32_0 : i32, i32
  }
  func.func @transform_9(%arg0: i32) -> (i32, i32) {
    %c0_i32 = arith.constant 0 : i32
    %c0_i32_0 = arith.constant 0 : i32
    %c0_i32_1 = arith.constant 0 : i32
    return %c0_i32, %c0_i32_0 : i32, i32
  }
  func.func @transform_10(%arg0: i32) -> (i32, i32) {
    %c0_i32 = arith.constant 0 : i32
    %c0_i32_0 = arith.constant 0 : i32
    %c0_i32_1 = arith.constant 0 : i32
    return %c0_i32, %c0_i32_0 : i32, i32
  }
  func.func @transform_11(%arg0: i32) -> (i32, i32) {
    %c0_i32 = arith.constant 0 : i32
    %c0_i32_0 = arith.constant 0 : i32
    %c0_i32_1 = arith.constant 0 : i32
    return %c0_i32, %c0_i32_0 : i32, i32
  }
  func.func @transform_12(%arg0: i32) -> (i32, i32) {
    %c0_i32 = arith.constant 0 : i32
    %c0_i32_0 = arith.constant 0 : i32
    %c0_i32_1 = arith.constant 0 : i32
    return %c0_i32, %c0_i32_0 : i32, i32
  }
  func.func @transform_13(%arg0: i32) -> (i32, i32) {
    %c0_i32 = arith.constant 0 : i32
    %c0_i32_0 = arith.constant 0 : i32
    %c0_i32_1 = arith.constant 0 : i32
    return %c0_i32, %c0_i32_0 : i32, i32
  }
  func.func @transform_14(%arg0: i32) -> (i32, i32) {
    %c0_i32 = arith.constant 0 : i32
    %c0_i32_0 = arith.constant 0 : i32
    %c0_i32_1 = arith.constant 0 : i32
    return %c0_i32, %c0_i32_0 : i32, i32
  }
  func.func @transform_15(%arg0: i32) -> (i32, i32) {
    %c0_i32 = arith.constant 0 : i32
    %c0_i32_0 = arith.constant 0 : i32
    %c0_i32_1 = arith.constant 0 : i32
    return %c0_i32, %c0_i32_0 : i32, i32
  }
  func.func @transform_16(%arg0: i32) -> (i32, i32) {
    %c0_i32 = arith.constant 0 : i32
    %c0_i32_0 = arith.constant 0 : i32
    return %arg0, %c0_i32 : i32, i32
  }
}

</mosaic_0001>

<bundles_post_ra>
// kernel: tpu_custom_call.1
= control target key start
LH: loop header
LB: loop body
LE: loop exit
PB: predicated region body
PF: predicated region fallthrough
CT: control target
= control target key end

     0   :  { %s1343_s0 = inlined_call_operand.hbm [shape: f32[8,10], index: 0, kind: input, shape index: {}]   ;;  %s1344_s1 = inlined_call_operand.hbm [shape: f32[8,6], index: 1, kind: input, shape index: {}]   ;;  %s1345_s2 = inlined_call_operand.vmem [shape: f32[10,32], index: 2, kind: input, shape index: {}]   ;;  %s1346_s3 = inlined_call_operand.hbm [shape: f32[6,32], index: 3, kind: input, shape index: {}]   ;;  %s1347_s4 = inlined_call_operand.hbm [shape: f32[1,32], index: 4, kind: input, shape index: {}]   ;;  %s1348_s5 = inlined_call_operand.vmem [shape: f32[32,32], index: 5, kind: input, shape index: {}]   ;;  %s1349_s6 = inlined_call_operand.hbm [shape: f32[1,32], index: 6, kind: input, shape index: {}]   ;;  %s1350_s7 = inlined_call_operand.vmem [shape: f32[32,1], index: 7, kind: input, shape index: {}]   ;;  %s1351_s8 = inlined_call_operand.<no memory space> [shape: f32[1,1], index: 8, kind: input, shape index: {}]   ;;  %s1352_s9 = inlined_call_operand.vmem [shape: f32[10,32], index: 9, kind: input, shape index: {}]   ;;  %s1353_s10 = inlined_call_operand.vmem [shape: f32[6,32], index: 10, kind: input, shape index: {}]   ;;  %s1354_s11 = inlined_call_operand.vmem [shape: f32[1,32], index: 11, kind: input, shape index: {}]   ;;  %s1355_s12 = inlined_call_operand.vmem [shape: f32[32,32], index: 12, kind: input, shape index: {}]   ;;  %s1356_s13 = inlined_call_operand.vmem [shape: f32[1,32], index: 13, kind: input, shape index: {}]   ;;  %s1357_s14 = inlined_call_operand.vmem [shape: f32[32,1], index: 14, kind: input, shape index: {}]   ;;  %s1358_s16 = inlined_call_operand.vmem [shape: f32[8,1], index: 16, kind: output, shape index: {}]   ;;  %s1359_s15 = inlined_call_operand.<no memory space> [shape: f32[1,1], index: 15, kind: input, shape index: {}]  }
   0x1   :  { %1361 = sst [smem:[#allocation15_spill]] %s1343_s0  ;;  %v21_v0 = vstv %s1351_s8  ;;  %v23_v1 = vstv %s1359_s15 }
   0x2   :  { %22 = vst [vmem:[#allocation2] sm:$0x1] %v21_v0  ;;  %24 = vst [vmem:[#allocation3] sm:$0x1] %v23_v1 }
   0x3   :  { %25 = vsyncpa [#allocation5], 0 }
   0x4   :  { %26 = vsyncpa [#allocation7], 0 }
   0x5   :  { %27 = vsyncpa [#allocation10], 0  ;;  %s1065_s25 = smov [#allocation6]   ;;  %s1066_s27 = smov [#allocation9]  }
   0x6   :  { %s44_s26 = sshll.u32 %s1065_s25, 4  ;;  %s66_s28 = sshll.u32 %s1066_s27, 4  ;;  %s45_s26 = int_to_ptr.vmem [resolvable:$true] %s44_s26  ;;  %s67_s28 = int_to_ptr.vmem [resolvable:$true] %s66_s28 }
   0x7   :  { %s949_s0 = scalar_lea.hbm %s1344_s1, 128 }
   0x8   :  { %p950_p0 = scmp.ne.s32.totalorder %s1344_s1, %s949_s0  ;;  %p953_p1 = scmp.lt.u32.totalorder %s949_s0, %s1344_s1 }
   0xa   :  { %p955_p2 = pnand %p953_p1, %p950_p0 }
   0xc   :  { %958 = shalt.err (!%p955_p2)
}
   0xd   :  { %s959_s19 = scalar_lea.vmem %s45_s26, 128  ;;  %p964_p4 = scmp.lt.s32.totalorder %s45_s26, %s45_s26 }
   0xe   :  { %p960_p3 = scmp.ne.s32.totalorder %s45_s26, %s959_s19  ;;  %p965_p5 = scmp.lt.s32.totalorder %s959_s19, %s959_s19 }
  0x10   :  { %p966_p6 = por %p965_p5, %p964_p4 }
  0x12   :  { %p967_p7 = pnand %p966_p6, %p960_p3 }
  0x14   :  { %970 = shalt.err (!%p967_p7)
}
  0x15   :  { %47 = dma.hbm_to_vmem [thread:$0]  %s1344_s1, 128, %s45_s26, [#allocation7]  }
  0x16   :  { %s971_s24 = scalar_lea.hbm %s1347_s4, 16 }
  0x17   :  { %p972_p8 = scmp.ne.s32.totalorder %s1347_s4, %s971_s24  ;;  %p975_p9 = scmp.lt.u32.totalorder %s971_s24, %s1347_s4 }
  0x19   :  { %p977_p10 = pnand %p975_p9, %p972_p8 }
  0x1b   :  { %980 = shalt.err (!%p977_p10)
}
  0x1c   :  { %s981_s0 = scalar_lea.vmem %s67_s28, 16  ;;  %s985_s8 = scalar_lea.vmem %s67_s28, 32 }
  0x1d   :  { %p982_p11 = scmp.ne.s32.totalorder %s67_s28, %s981_s0  ;;  %p986_p12 = scmp.lt.s32.totalorder %s67_s28, %s67_s28 }
  0x1e   :  { %p987_p13 = scmp.lt.s32.totalorder %s985_s8, %s981_s0 }
  0x20   :  { %p988_p0 = por %p987_p13, %p986_p12 }
  0x22   :  { %p989_p1 = pnand %p988_p0, %p982_p11 }
  0x24   :  { %992 = shalt.err (!%p989_p1)
}
  0x25   :  { %69 = dma.hbm_to_vmem [thread:$0]  %s1347_s4, 16, %s67_s28, [#allocation10]  }
  0x26   :  { %s1067_s17 = smov [#allocation4]   ;;  %s1068_s18 = smov [#allocation8]  }
  0x27   :  { %s34_s15 = sshll.u32 %s1067_s17, 4  ;;  %s56_s19 = sshll.u32 %s1068_s18, 4  ;;  %s35_s15 = int_to_ptr.vmem [resolvable:$true] %s34_s15  ;;  %s57_s19 = int_to_ptr.vmem [resolvable:$true] %s56_s19 }
  0x28   :  { %s1362_s22 = sld [smem:[#allocation15_spill]] }
  0x2e   :  { %s993_s23 = scalar_lea.hbm %s1362_s22, 128 }
  0x2f   :  { %p994_p2 = scmp.ne.s32.totalorder %s1362_s22, %s993_s23  ;;  %p997_p3 = scmp.lt.u32.totalorder %s993_s23, %s1362_s22 }
  0x31   :  { %p999_p4 = pnand %p997_p3, %p994_p2 }
  0x33   :  { %1002 = shalt.err (!%p999_p4)
}
  0x34   :  { %s1003_s4 = scalar_lea.vmem %s35_s15, 128  ;;  %p1008_p6 = scmp.lt.s32.totalorder %s35_s15, %s35_s15 }
  0x35   :  { %p1004_p5 = scmp.ne.s32.totalorder %s35_s15, %s1003_s4  ;;  %p1009_p7 = scmp.lt.s32.totalorder %s1003_s4, %s1003_s4 }
  0x37   :  { %p1010_p8 = por %p1009_p7, %p1008_p6 }
  0x39   :  { %p1011_p9 = pnand %p1010_p8, %p1004_p5 }
  0x3b   :  { %1014 = shalt.err (!%p1011_p9)
}
  0x3c   :  { %37 = dma.hbm_to_vmem [thread:$0]  %s1362_s22, 128, %s35_s15, [#allocation5]  }
  0x3d   :  { %s1015_s1 = scalar_lea.hbm %s1346_s3, 128 }
  0x3e   :  { %p1016_p10 = scmp.ne.s32.totalorder %s1346_s3, %s1015_s1  ;;  %p1019_p11 = scmp.lt.u32.totalorder %s1015_s1, %s1346_s3 }
  0x40   :  { %p1021_p12 = pnand %p1019_p11, %p1016_p10 }
  0x42   :  { %1024 = shalt.err (!%p1021_p12)
}
  0x43   :  { %s1025_s21 = scalar_lea.vmem %s57_s19, 128  ;;  %p1030_p0 = scmp.lt.s32.totalorder %s57_s19, %s57_s19 }
  0x44   :  { %p1026_p13 = scmp.ne.s32.totalorder %s57_s19, %s1025_s21  ;;  %p1031_p1 = scmp.lt.s32.totalorder %s1025_s21, %s1025_s21 }
  0x46   :  { %p1032_p2 = por %p1031_p1, %p1030_p0 }
  0x48   :  { %p1033_p3 = pnand %p1032_p2, %p1026_p13 }
  0x4a   :  { %1036 = shalt.err (!%p1033_p3)
}
  0x4b   :  { %59 = dma.hbm_to_vmem [thread:$0]  %s1346_s3, 128, %s57_s19, [#allocation7]  }
  0x4c   :  { %s1069_s23 = smov [#allocation11]   ;;  %s1037_s29 = scalar_lea.hbm %s1349_s6, 16 }
  0x4d   :  { %s78_s24 = sshll.u32 %s1069_s23, 4  ;;  %p1038_p4 = scmp.ne.s32.totalorder %s1349_s6, %s1037_s29  ;;  %s79_s24 = int_to_ptr.vmem [resolvable:$true] %s78_s24 }
  0x4e   :  { %p1041_p5 = scmp.lt.u32.totalorder %s1037_s29, %s1349_s6 }
  0x50   :  { %p1043_p6 = pnand %p1041_p5, %p1038_p4 }
  0x52   :  { %1046 = shalt.err (!%p1043_p6)
}
  0x53   :  { %s1047_s8 = scalar_lea.vmem %s79_s24, 16  ;;  %s1051_s3 = scalar_lea.vmem %s79_s24, 32 }
  0x54   :  { %p1048_p7 = scmp.ne.s32.totalorder %s79_s24, %s1047_s8  ;;  %p1052_p8 = scmp.lt.s32.totalorder %s79_s24, %s79_s24 }
  0x55   :  { %p1053_p9 = scmp.lt.s32.totalorder %s1051_s3, %s1047_s8 }
  0x57   :  { %p1054_p10 = por %p1053_p9, %p1052_p8 }
  0x59   :  { %p1055_p11 = pnand %p1054_p10, %p1048_p7 }
  0x5b   :  { %1058 = shalt.err (!%p1055_p11)
}
  0x5c   :  { %81 = dma.hbm_to_vmem [thread:$0]  %s1349_s6, 16, %s79_s24, [#allocation10]  }
  0x5d   :  { %1059 = dma.done.wait [#allocation5], 128  }
  0x5e   :  { %1060 = vsyncadd [#allocation5], 4294967168 }
  0x5f   :  { %1061 = dma.done.wait [#allocation7], 256  }
  0x60   :  { %1062 = vsyncadd [#allocation7], 4294967040 }
  0x61   :  { %1063 = dma.done.wait [#allocation10], 32  }
  0x62   :  { %1064 = vsyncadd [#allocation10], 4294967264  ;;  %v1070_v2 = vmov 0.0|0.0   ;;  %v1071_v3 = vmov 0.0   ;;  %vm1072_vm0 = vmmov 0   ;;  %vm203_vm1 = vcmask 1041408  }
  0x63   :  { %908 = vmatprep.subr.bf16.mxu1 %v1070_v2  ;;  %840 = vmatprep.subr.mxu0 %v1071_v3  ;;  %vm125_vm2 = vcmask 1045504   ;;  %vm1073_vm3 = vmmov 1   ;;  %vm121_vm5 = vcmask 48128   ;;  %v117_v5 = vld [vmem:[%s1345_s2] sm:$0xff]  ;;  %v118_v6 = vld [vmem:[%s1345_s2 + $0x8] sm:$0x3] }
  0x64   :  { %842 = vmatprep.mubr.msk.f32.mxu0 %vm1072_vm0, %v1071_v3  ;;  %849 = vmatprep.mubr.msk.f32.mxu1 %vm1072_vm0, %v1071_v3  ;;  %vm1231_vm4 = vmpackc.low %vm203_vm1, %vm1073_vm3  ;;  %v119_v7 = vld [vmem:[#allocation8] sm:$0x3f]  ;;  %v909_v8 = vpack.c.bf16 %v118_v6, %v117_v5  ;;  %v116_v9 = vld [vmem:[#allocation6] sm:$0xff]  ;;  %vm199_vm6 = vcmask 80896   ;;  %vm296_vm7 = vcmask 261120   ;;  %vm783_vm8 = vcmask 7168  }
  0x65   :  { %841 = vmatpush3.msk.msra.mxu0 %vm125_vm2, %v119_v7  ;;  %v115_v10 = vld [vmem:[#allocation4] sm:$0xff]  ;;  %v287_v14 = vld [vmem:[%s1348_s5 + $0x10] sm:$0xff]  ;;  %v288_v15 = vld [vmem:[%s1348_s5 + $0x18] sm:$0xff] }
  0x66   :  { %843 = vmatmul.mubr.msk.f32.vlgmr.msra.gmra.mrb[0].mxu0 %vm121_vm5, %v116_v9  ;;  %912 = vmatprep.subr.bf16.mxu0 %v1070_v2  ;;  %v285_v11 = vld [vmem:[%s1348_s5] sm:$0xff]  ;;  %v286_v12 = vld [vmem:[%s1348_s5 + $0x8] sm:$0xff]  ;;  %v916_v16 = vpack.c.bf16 %v288_v15, %v287_v14  ;;  %v796_v22 = vld [vmem:[#allocation9] ss:$0 sm:$0xff] }
  0x67   :  { %911 = vmatpush3.bf16.msk.msra.mxu1 %vm1231_vm4, %v909_v8  ;;  %860 = vmatprep.mubr.msk.f32.mxu0 %vm1072_vm0, %v1071_v3  ;;  %v913_v13 = vpack.c.bf16 %v286_v12, %v285_v11  ;;  %v371_v17 = vld [vmem:[%s1350_s7] sm:$0xff]  ;;  %v372_v18 = vld [vmem:[%s1350_s7 + $0x8] sm:$0xff]  ;;  %v373_v28 = vld [vmem:[%s1350_s7 + $0x10] sm:$0xff] }
  0x68   :  { %918 = vmatprep.subr.bf16.mxu1 %v1070_v2  ;;  %v919_v19 = vpack.c.bf16 %v372_v18, %v371_v17  ;;  %v374_v29 = vld [vmem:[%s1350_s7 + $0x18] sm:$0xff]  ;;  %v457_v31 = vld [vmem:[%s1353_s10] sm:$0x3f]  ;;  %v456_v34 = vld [vmem:[%s1352_s9 + $0x8] sm:$0x3] }
  0x69   :  { %914 = vmatpush3.bf16.msra.mxu0 %v913_v13  ;;  %v922_v30 = vpack.c.bf16 %v374_v29, %v373_v28  ;;  %v797_v32 = vld [vmem:[#allocation11] ss:$0 sm:$0xff]  ;;  %v455_v33 = vld [vmem:[%s1352_s9] sm:$0xff]  ;;  %v614_v41 = vld [vmem:[%s1355_s12 + $0x8] sm:$0xff] }
  0x6a   :  { %850 = vmatmul.mubr.msk.f32.vlgmr.msra.gmra.mrb[0].mxu1 %vm199_vm6, %v115_v10  ;;  %915 = vmatprep.subr.bf16.mxu0 %v1070_v2  ;;  %v925_v38 = vpack.c.bf16 %v456_v34, %v455_v33  ;;  %v613_v40 = vld [vmem:[%s1355_s12] sm:$0xff]  ;;  %v615_v45 = vld [vmem:[%s1355_s12 + $0x10] sm:$0xff]  ;;  %v616_v46 = vld [vmem:[%s1355_s12 + $0x18] sm:$0xff] }
  0x6b   :  { %871 = vmatprep.mubr.msk.f32.mxu1 %vm1072_vm0, %v1071_v3  ;;  %920 = vmatpush3.bf16.msra.mxu1 %v919_v19  ;;  %v929_v43 = vpack.c.bf16 %v614_v41, %v613_v40  ;;  %v932_v47 = vpack.c.bf16 %v616_v46, %v615_v45  ;;  %v698_v48 = vld [vmem:[%s1357_s14] sm:$0xff]  ;;  %v699_v49 = vld [vmem:[%s1357_s14 + $0x8] sm:$0xff]  ;;  %v700_v59 = vld [vmem:[%s1357_s14 + $0x10] sm:$0xff] }
  0x6c   :  { %921 = vmatprep.subr.bf16.mxu1 %v1070_v2  ;;  %v935_v50 = vpack.c.bf16 %v699_v49, %v698_v48  ;;  %v805_v53 = vld [vmem:[%s1354_s11] ss:$0 sm:$0xff]  ;;  %v701_v60 = vld [vmem:[%s1357_s14 + $0x18] sm:$0xff]  ;;  %v808_v4 = vld [vmem:[#allocation3] ss:$0 sm:$0xff] }
  0x6d   :  { %917 = vmatpush3.bf16.msra.mxu0 %v916_v16  ;;  %v938_v61 = vpack.c.bf16 %v701_v60, %v700_v59  ;;  %v806_v62 = vld [vmem:[%s1356_s13] ss:$0 sm:$0xff] }
  0x6e   :  { %874 = vmatprep.subr.mxu0 %v1071_v3 }
  0x6f   :  { %923 = vmatpush3.bf16.msra.mxu1 %v922_v30 }
  0x70   :  { %924 = vmatprep.subr.bf16.mxu1 %v1070_v2 }
 0x139   :  { %v195_v20 = vpop.f32.mrb[0].mxu0 }
 0x13a   :  { %v844_v21 = vpop.f32.mrb[1].mxu0 }
 0x13d   :  { %v273_v23 = vpop.f32.mrb[0].mxu1 }
 0x13e   :  { %v274_v24 = vadd.f32 %v273_v23, %v195_v20  ;;  %v851_v25 = vpop.f32.mrb[1].mxu1 }
 0x140   :  { %v283_v26 = vadd.f32 %v796_v22, %v274_v24 }
 0x142   :  { %v284_v27 = vmax.f32 %v283_v26, 0.0 }
 0x144   :  { %861 = vmatmul.mubr.msk.f32.vlgmr.msra.gmra.mrb[2].mxu0 %vm296_vm7, %v284_v27 }
 0x145   :  { %876 = vmatprep.mubr.msk.f32.mxu0 %vm1072_vm0, %v1071_v3  ;;  %875 = vmatpush3.msk.msra.mxu0 %vm125_vm2, %v457_v31 }
 0x146   :  { %928 = vmatprep.subr.bf16.mxu0 %v1070_v2 }
 0x148   :  { %877 = vmatmul.mubr.msk.f32.vlgmr.msra.gmra.mrb[4].mxu0 %vm121_vm5, %v116_v9 }
 0x149   :  { %894 = vmatprep.mubr.msk.f32.mxu0 %vm1072_vm0, %v1071_v3  ;;  %930 = vmatpush3.bf16.msra.mxu0 %v929_v43 }
 0x14a   :  { %931 = vmatprep.subr.bf16.mxu0 %v1070_v2 }
 0x14d   :  { %933 = vmatpush3.bf16.msra.mxu0 %v932_v47 }
 0x217   :  { %v366_v35 = vpop.f32.mrb[2].mxu0 }
 0x218   :  { %v367_v36 = vadd.f32 %v797_v32, %v366_v35  ;;  %v862_v37 = vpop.f32.mrb[3].mxu0 }
 0x21a   :  { %v370_v39 = vmax.f32 %v367_v36, 0.0 }
 0x21b   :  { %v528_v42 = vpop.f32.mrb[4].mxu0 }
 0x21c   :  { %872 = vmatmul.mubr.msk.f32.vlgmr.msra.gmra.mrb[2].mxu1 %vm296_vm7, %v370_v39  ;;  %v878_v44 = vpop.f32.mrb[5].mxu0 }
 0x21d   :  { %927 = vmatpush3.bf16.msk.msra.mxu1 %vm1231_vm4, %v925_v38  ;;  %883 = vmatprep.mubr.msk.f32.mxu1 %vm1072_vm0, %v1071_v3 }
 0x21e   :  { %934 = vmatprep.subr.bf16.mxu1 %v1070_v2 }
 0x220   :  { %884 = vmatmul.mubr.msk.f32.vlgmr.msra.gmra.mrb[4].mxu1 %vm199_vm6, %v115_v10 }
 0x221   :  { %905 = vmatprep.mubr.msk.f32.mxu1 %vm1072_vm0, %v1071_v3  ;;  %936 = vmatpush3.bf16.msra.mxu1 %v935_v50  ;;  %v799_v3 = vld [vmem:[#allocation2] ss:$0 sm:$0xff] }
 0x222   :  { %937 = vmatprep.subr.bf16.mxu1 %v1070_v2 }
 0x225   :  { %939 = vmatpush3.bf16.msra.mxu1 %v938_v61 }
 0x2ef   :  { %v451_v51 = vpop.f32.mrb[2].mxu1 }
 0x2f0   :  { %v873_v52 = vpop.f32.mrb[3].mxu1  ;;  %v452_v6 = vadd.f32 %v799_v3, %v451_v51 }
 0x2f3   :  { %v601_v54 = vpop.f32.mrb[4].mxu1 }
 0x2f4   :  { %v602_v55 = vadd.f32 %v601_v54, %v528_v42  ;;  %v885_v56 = vpop.f32.mrb[5].mxu1 }
 0x2f6   :  { %v611_v57 = vadd.f32 %v805_v53, %v602_v55 }
 0x2f8   :  { %v612_v58 = vmax.f32 %v611_v57, 0.0 }
 0x2fa   :  { %895 = vmatmul.mubr.msk.f32.vlgmr.msra.gmra.mrb[6].mxu0 %vm296_vm7, %v612_v58 }
 0x3cd   :  { %v693_v63 = vpop.f32.mrb[6].mxu0 }
 0x3ce   :  { %v694_v0 = vadd.f32 %v806_v62, %v693_v63  ;;  %v896_v1 = vpop.f32.mrb[7].mxu0 }
 0x3d0   :  { %v697_v2 = vmax.f32 %v694_v0, 0.0 }
 0x3d2   :  { %906 = vmatmul.mubr.msk.f32.vlgmr.msra.gmra.mrb[6].mxu1 %vm296_vm7, %v697_v2 }
 0x4a5   :  { %v778_v5 = vpop.f32.mrb[6].mxu1 }
 0x4a6   :  { %v779_v7 = vadd.f32 %v808_v4, %v778_v5  ;;  %v907_v8 = vpop.f32.mrb[7].mxu1 }
 0x4a8   :  { %v782_v9 = vmax.f32 %v452_v6, %v779_v7 }
 0x4aa   :  { %784 = vst.msk [vmem:[%s1358_s16] sm:$0xff] %vm783_vm8, %v782_v9 }
 0x4ab   :  { %789 = vsyncpa [#allocation5], 1 }
 0x4ac   :  { %790 = vsyncpa [#allocation7], 1 }
 0x4ad   :  { %791 = vsyncpa [#allocation10], 1 }

</bundles_post_ra>
